<compile_context>
chip_gen: v5e
topology: v5e:2x2
jax: 0.10.0
libtpu: 0.0.40
codegen_flags: <defaults>
</compile_context>

<pallas_src>
import jax
import jax.numpy as jnp
from jax.experimental import pallas as pl
from jax.experimental.pallas import tpu as pltpu

IN_FEATURES = 5
OUT_FEATURES = 3


def _linear_kernel(x_ref, wt_ref, b_ref, o_ref):
    # x_ref : (B, IN)    VMEM
    # wt_ref: (IN, OUT)  VMEM  (weight.T, prepared once outside the hot path)
    # b_ref : (1, OUT)   VMEM
    # o_ref : (B, OUT)   VMEM
    x = x_ref[...]
    # Bias add folded into accumulator init (sublane broadcast of (1, OUT)).
    acc = jnp.broadcast_to(b_ref[...], o_ref.shape).astype(jnp.float32)
    # K=5, N=3: skip the MXU (it would be a >99%-padded pass) and do the
    # contraction on the VPU as 5 statically-unrolled broadcast FMAs.
    for k in range(IN_FEATURES):
        acc = acc + x[:, k:k + 1] * wt_ref[k:k + 1, :]
    if acc.dtype != o_ref.dtype:
        acc = acc.astype(o_ref.dtype)
    o_ref[...] = acc


def _forward_single(x, wt, b2d):
    """Small batch: one gridless invocation, full arrays resident in VMEM."""
    batch = x.shape[0]
    return pl.pallas_call(
        _linear_kernel,
        out_shape=jax.ShapeDtypeStruct((batch, OUT_FEATURES), x.dtype),
        in_specs=[
            pl.BlockSpec(memory_space=pltpu.MemorySpace.VMEM),
            pl.BlockSpec(memory_space=pltpu.MemorySpace.VMEM),
            pl.BlockSpec(memory_space=pltpu.MemorySpace.VMEM),
        ],
        out_specs=pl.BlockSpec(memory_space=pltpu.MemorySpace.VMEM),
    )(x, wt, b2d)


def _forward_tiled(x, wt, b2d, tb):
    """Large batch: tile the batch axis; weights/bias stay resident."""
    batch = x.shape[0]  # caller guarantees batch % tb == 0
    return pl.pallas_call(
        _linear_kernel,
        out_shape=jax.ShapeDtypeStruct((batch, OUT_FEATURES), x.dtype),
        grid=(batch // tb,),
        in_specs=[
            pl.BlockSpec((tb, IN_FEATURES), lambda i: (i, 0)),
            pl.BlockSpec((IN_FEATURES, OUT_FEATURES), lambda i: (0, 0)),
            pl.BlockSpec((1, OUT_FEATURES), lambda i: (0, 0)),
        ],
        out_specs=pl.BlockSpec((tb, OUT_FEATURES), lambda i: (i, 0)),
        compiler_params=pltpu.CompilerParams(
            dimension_semantics=("parallel",)  # independent batch tiles (2 TCs on v7x)
        ),
    )(x, wt, b2d)


def dqn_net_forward(x, wt, b2d, *, batch_tile=512):
    """y = x @ weight.T + bias.

    `wt` is the pre-transposed (IN, OUT) weight and `b2d` the (1, OUT) bias,
    both produced once by prepare_params() outside the per-call hot path.
    """
    batch = x.shape[0]
    if batch <= batch_tile:
        return _forward_single(x, wt, b2d)
    # Pad batch up to a multiple of the tile so every grid block is full.
    padded = ((batch + batch_tile - 1) // batch_tile) * batch_tile
    x_p = jnp.pad(x, ((0, padded - batch), (0, 0))) if padded != batch else x
    y = _forward_tiled(x_p, wt, b2d, batch_tile)
    return y[:batch] if padded != batch else y


def prepare_params(weight, bias):
    """One-time conversion from PyTorch layout ((OUT,IN), (OUT,)) to kernel
    layout ((IN,OUT), (1,OUT)).  Do this at parameter-setup time, not per call."""
    return weight.T, bias.reshape(1, OUT_FEATURES)


def init_params(key, in_features=IN_FEATURES, out_features=OUT_FEATURES):
    # Mirrors PyTorch's default Linear init: U(-1/sqrt(in), 1/sqrt(in)).
    kw, kb = jax.random.split(key)
    bound = 1.0 / jnp.sqrt(jnp.float32(in_features))
    weight = jax.random.uniform(
        kw, (out_features, in_features), jnp.float32, -bound, bound
    )
    bias = jax.random.uniform(kb, (out_features,), jnp.float32, -bound, bound)
    return weight, bias


if __name__ == "__main__":
    key = jax.random.PRNGKey(0)
    k_x, k_p, k_x2 = jax.random.split(key, 3)

    weight, bias = init_params(k_p)           # PyTorch-convention params
    wt, b2d = prepare_params(weight, bias)    # one-time layout prep (outside hot path)

    # Small batch (multiple of 8 for clean sublane layout) -> gridless path.
    batch = 8
    x = jax.random.normal(k_x, (batch, IN_FEATURES), jnp.float32)
    y = jax.block_until_ready(dqn_net_forward(x, wt, b2d))
    y_ref = x @ weight.T + bias
    assert y.shape == (batch, OUT_FEATURES)
    assert jnp.allclose(y, y_ref, atol=1e-5, rtol=1e-5)

    # Larger batch exercises the batch-tiled ("parallel") grid path.
    batch2 = 1024
    x2 = jax.random.normal(k_x2, (batch2, IN_FEATURES), jnp.float32)
    y2 = jax.block_until_ready(dqn_net_forward(x2, wt, b2d))
    y2_ref = x2 @ weight.T + bias
    assert y2.shape == (batch2, OUT_FEATURES)
    assert jnp.allclose(y2, y2_ref, atol=1e-5, rtol=1e-5)

    print("KERNEL_OK")
</pallas_src>

<mosaic_0001>
module attributes {stable_mosaic.version = 11 : i64} {
  func.func @_linear_kernel(%arg0: memref<8x5xf32, #tpu.memory_space<vmem>>, %arg1: memref<5x3xf32, #tpu.memory_space<vmem>>, %arg2: memref<1x3xf32, #tpu.memory_space<vmem>>, %arg3: memref<8x3xf32, #tpu.memory_space<vmem>>) attributes {dimension_semantics = [], scalar_prefetch = 0 : i64, scratch_operands = 0 : i64, tpu.core_type = #tpu.core_type<tc>} {
    %c0 = arith.constant 0 : index
    %c0_0 = arith.constant 0 : index
    %0 = vector.load %arg0[%c0, %c0_0] : memref<8x5xf32, #tpu.memory_space<vmem>>, vector<8x5xf32>
    %c0_1 = arith.constant 0 : index
    %c0_2 = arith.constant 0 : index
    %1 = vector.load %arg2[%c0_1, %c0_2] : memref<1x3xf32, #tpu.memory_space<vmem>>, vector<1x3xf32>
    %2 = vector.shape_cast %1 : vector<1x3xf32> to vector<1x3xf32>
    %3 = vector.broadcast %2 : vector<1x3xf32> to vector<8x3xf32>
    %4 = vector.extract_strided_slice %0 {offsets = [0, 0], sizes = [8, 1], strides = [1, 1]} : vector<8x5xf32> to vector<8x1xf32>
    %c0_3 = arith.constant 0 : index
    %c0_4 = arith.constant 0 : index
    %5 = vector.load %arg1[%c0_3, %c0_4] : memref<5x3xf32, #tpu.memory_space<vmem>>, vector<1x3xf32>
    %6 = vector.broadcast %4 : vector<8x1xf32> to vector<8x3xf32>
    %7 = vector.broadcast %5 : vector<1x3xf32> to vector<8x3xf32>
    %8 = arith.mulf %6, %7 : vector<8x3xf32>
    %9 = arith.addf %3, %8 : vector<8x3xf32>
    %10 = vector.extract_strided_slice %0 {offsets = [0, 1], sizes = [8, 1], strides = [1, 1]} : vector<8x5xf32> to vector<8x1xf32>
    %c1 = arith.constant 1 : index
    %c0_5 = arith.constant 0 : index
    %11 = vector.load %arg1[%c1, %c0_5] : memref<5x3xf32, #tpu.memory_space<vmem>>, vector<1x3xf32>
    %12 = vector.broadcast %10 : vector<8x1xf32> to vector<8x3xf32>
    %13 = vector.broadcast %11 : vector<1x3xf32> to vector<8x3xf32>
    %14 = arith.mulf %12, %13 : vector<8x3xf32>
    %15 = arith.addf %9, %14 : vector<8x3xf32>
    %16 = vector.extract_strided_slice %0 {offsets = [0, 2], sizes = [8, 1], strides = [1, 1]} : vector<8x5xf32> to vector<8x1xf32>
    %c2 = arith.constant 2 : index
    %c0_6 = arith.constant 0 : index
    %17 = vector.load %arg1[%c2, %c0_6] : memref<5x3xf32, #tpu.memory_space<vmem>>, vector<1x3xf32>
    %18 = vector.broadcast %16 : vector<8x1xf32> to vector<8x3xf32>
    %19 = vector.broadcast %17 : vector<1x3xf32> to vector<8x3xf32>
    %20 = arith.mulf %18, %19 : vector<8x3xf32>
    %21 = arith.addf %15, %20 : vector<8x3xf32>
    %22 = vector.extract_strided_slice %0 {offsets = [0, 3], sizes = [8, 1], strides = [1, 1]} : vector<8x5xf32> to vector<8x1xf32>
    %c3 = arith.constant 3 : index
    %c0_7 = arith.constant 0 : index
    %23 = vector.load %arg1[%c3, %c0_7] : memref<5x3xf32, #tpu.memory_space<vmem>>, vector<1x3xf32>
    %24 = vector.broadcast %22 : vector<8x1xf32> to vector<8x3xf32>
    %25 = vector.broadcast %23 : vector<1x3xf32> to vector<8x3xf32>
    %26 = arith.mulf %24, %25 : vector<8x3xf32>
    %27 = arith.addf %21, %26 : vector<8x3xf32>
    %28 = vector.extract_strided_slice %0 {offsets = [0, 4], sizes = [8, 1], strides = [1, 1]} : vector<8x5xf32> to vector<8x1xf32>
    %c4 = arith.constant 4 : index
    %c0_8 = arith.constant 0 : index
    %29 = vector.load %arg1[%c4, %c0_8] : memref<5x3xf32, #tpu.memory_space<vmem>>, vector<1x3xf32>
    %30 = vector.broadcast %28 : vector<8x1xf32> to vector<8x3xf32>
    %31 = vector.broadcast %29 : vector<1x3xf32> to vector<8x3xf32>
    %32 = arith.mulf %30, %31 : vector<8x3xf32>
    %33 = arith.addf %27, %32 : vector<8x3xf32>
    %c0_9 = arith.constant 0 : index
    %c0_10 = arith.constant 0 : index
    %34 = vector.load %arg3[%c0_9, %c0_10] : memref<8x3xf32, #tpu.memory_space<vmem>>, vector<8x3xf32>
    tpu.vector_store %arg3[%c0_9, %c0_10], %33 {strides = array<i32>} : memref<8x3xf32, #tpu.memory_space<vmem>>, vector<8x3xf32>,
    return
  }
}

</mosaic_0001>

<bundles_post_ra>
// kernel: tpu_custom_call.1
= control target key start
LH: loop header
LB: loop body
LE: loop exit
PB: predicated region body
PF: predicated region fallthrough
CT: control target
= control target key end

     0   :  { %v83_v0 = vmov 0   ;;  %v84_v2 = vmov 2   ;;  %v85_v3 = vmov 4   ;;  %v86_v4 = vmov 1   ;;  %s132_s0 = inlined_call_operand.vmem [shape: f32[8,5], index: 0, kind: input, shape index: {}]   ;;  %s133_s2 = inlined_call_operand.vmem [shape: f32[1,3], index: 2, kind: input, shape index: {}]   ;;  %s134_s1 = inlined_call_operand.vmem [shape: f32[5,3], index: 1, kind: input, shape index: {}]   ;;  %s135_s3 = inlined_call_operand.vmem [shape: f32[8,3], index: 3, kind: output, shape index: {}]  }
   0x1   :  { %71 = vset.pattern.permute.xlu0 %v83_v0  ;;  %v14_v1 = vld [vmem:[%s132_s0] sm:$0xff]  ;;  %73 = vset.pattern.permute.xlu1 %v84_v2  ;;  %v87_v5 = vmov 3   ;;  %vm60_vm0 = vcmask 23552  }
   0x2   :  { %22 = vperm.xlu0 %71, %v14_v1   ;;  %38 = vperm.xlu1 %73, %v14_v1   ;;  %v78_v8 = vld [vmem:[%s134_s1] ss:$0 sm:$0xff]  ;;  %v80_v11 = vld [vmem:[%s134_s1 + $0x1] ss:$0 sm:$0xff]  ;;  %v79_v12 = vld [vmem:[%s134_s1 + $0x2] ss:$0 sm:$0xff] }
   0x3   :  { %75 = vset.pattern.permute.xlu2 %v85_v3  ;;  %v77_v9 = vld [vmem:[%s133_s2] ss:$0 sm:$0xff]  ;;  %v81_v13 = vld [vmem:[%s134_s1 + $0x3] ss:$0 sm:$0xff]  ;;  %v82_v18 = vld [vmem:[%s134_s1 + $0x4] ss:$0 sm:$0xff] }
   0x4   :  { %54 = vperm.xlu2 %75, %v14_v1  }
   0xa   :  { %72 = vset.pattern.permute.xlu0 %v86_v4  ;;  %74 = vset.pattern.permute.xlu1 %v87_v5 }
   0xb   :  { %30 = vperm.xlu0 %72, %v14_v1   ;;  %46 = vperm.xlu1 %74, %v14_v1  }
  0x13   :  { %76 = vset.pattern.permute.xlu0 %v85_v3 }
  0x5e   :  { %v55_v19 = vpop.permute.xlu2 %54 }
  0x5f   :  { %v58_v24 = vmul.f32 %v82_v18, %v55_v19 }
  0x74   :  { %v23_v6 = vpop.permute.xlu0 %22  ;;  %v39_v7 = vpop.permute.xlu1 %38 }
  0x75   :  { %v26_v10 = vmul.f32 %v78_v8, %v23_v6  ;;  %v42_v20 = vmul.f32 %v79_v12, %v39_v7 }
  0x77   :  { %v27_v16 = vadd.f32 %v77_v9, %v26_v10 }
  0x7d   :  { %v31_v14 = vpop.permute.xlu0 %30  ;;  %v47_v15 = vpop.permute.xlu1 %46 }
  0x7e   :  { %v34_v17 = vmul.f32 %v80_v11, %v31_v14  ;;  %v50_v22 = vmul.f32 %v81_v13, %v47_v15 }
  0x80   :  { %v35_v21 = vadd.f32 %v34_v17, %v27_v16 }
  0x82   :  { %v43_v23 = vadd.f32 %v42_v20, %v35_v21 }
  0x84   :  { %v51_v25 = vadd.f32 %v50_v22, %v43_v23 }
  0x86   :  { %v59_v26 = vadd.f32 %v58_v24, %v51_v25 }
  0x88   :  { %61 = vst.msk [vmem:[%s135_s3] sm:$0xff] %vm60_vm0, %v59_v26 }

</bundles_post_ra>
